<compile_context>
chip_gen: v7x
topology: tpu7x:2x2x1
jax: 0.10.0
libtpu: 0.0.40
codegen_flags: <defaults>
</compile_context>

<pallas_src>
import jax
import jax.numpy as jnp
from jax.experimental import pallas as pl
from jax.experimental.pallas import tpu as pltpu


def _disentangle_fused_kernel(z_ref, w_ref, a_ref, s_ref):
    # Single MXU matmul: (B, D) @ (D, 2H) -> (B, 2H), f32 accumulate.
    acc = jnp.dot(z_ref[...], w_ref[...], preferred_element_type=jnp.float32)
    h = a_ref.shape[-1]
    # In-kernel split: halves go straight to their output refs; no wrapper
    # slicing / extra HBM traffic.  Columns [0:H] -> act, [H:2H] -> sp.
    a_ref[...] = acc[:, :h].astype(a_ref.dtype)
    s_ref[...] = acc[:, h:].astype(s_ref.dtype)


def prepare_fused_weight(w_act, w_sp, compute_dtype=None):
    """One-time weight prep (NOT per forward call).

    w_act, w_sp: PyTorch-style (H, D) Linear weights (no bias).
    Returns a single (D, 2H) operand; columns [0:H] -> act, [H:2H] -> sp.
    Pass compute_dtype=jnp.bfloat16 to run the MXU in bf16 (z is cast to match
    inside disentangle_net_fused; accumulation stays f32).
    """
    w_fused = jnp.concatenate(
        [jnp.asarray(w_act).T, jnp.asarray(w_sp).T], axis=1
    )  # (D, 2H)
    if compute_dtype is not None:
        w_fused = w_fused.astype(compute_dtype)
    return w_fused


def disentangle_net_fused(z, w_fused, out_dtype=None):
    """z: (B, D); w_fused: (D, 2H) from prepare_fused_weight.

    Returns (a_vec, s_vec), each (B, H), matching
    (act_embed(z), sp_embed(z)) from the torch module.
    """
    B, D = z.shape
    Dw, H2 = w_fused.shape
    assert Dw == D and H2 % 2 == 0
    H = H2 // 2

    out_dtype = z.dtype if out_dtype is None else out_dtype
    # Cast z to the weight's compute dtype so both MXU operands are consistent
    # (casting only the weight would be silently promoted back by jnp.dot).
    if z.dtype != w_fused.dtype:
        z = z.astype(w_fused.dtype)

    in_itemsize = jnp.dtype(w_fused.dtype).itemsize
    out_itemsize = jnp.dtype(out_dtype).itemsize
    cost = pl.CostEstimate(
        flops=2 * B * D * H2,
        bytes_accessed=in_itemsize * (B * D + D * H2) + out_itemsize * B * H2,
        transcendentals=0,
    )

    a_vec, s_vec = pl.pallas_call(
        _disentangle_fused_kernel,
        out_shape=(
            jax.ShapeDtypeStruct((B, H), out_dtype),
            jax.ShapeDtypeStruct((B, H), out_dtype),
        ),
        # No grid: whole arrays resident in VMEM, no pipeline overhead.
        in_specs=[
            pl.BlockSpec(memory_space=pltpu.MemorySpace.VMEM),
            pl.BlockSpec(memory_space=pltpu.MemorySpace.VMEM),
        ],
        out_specs=(
            pl.BlockSpec(memory_space=pltpu.MemorySpace.VMEM),
            pl.BlockSpec(memory_space=pltpu.MemorySpace.VMEM),
        ),
        cost_estimate=cost,
    )(z, w_fused)
    return a_vec, s_vec


def disentangle_net(z, w_act, w_sp):
    """Convenience wrapper taking torch-style (H, D) weights.

    For production use, call prepare_fused_weight once and reuse w_fused.
    """
    w_fused = prepare_fused_weight(w_act, w_sp)
    return disentangle_net_fused(z, w_fused)


if __name__ == "__main__":
    # Deterministic synthetic parameters / inputs (no checkpoint loading).
    B, D, H = 8, 32, 64

    key = jax.random.PRNGKey(0)
    k_z, k_wa, k_ws = jax.random.split(key, 3)

    z = jax.random.normal(k_z, (B, D), dtype=jnp.float32)
    # nn.Linear(D, H) weights have shape (H, D); mimic uniform(-1/sqrt(D), 1/sqrt(D)).
    bound = 1.0 / jnp.sqrt(jnp.float32(D))
    w_act = jax.random.uniform(k_wa, (H, D), jnp.float32, -bound, bound)
    w_sp = jax.random.uniform(k_ws, (H, D), jnp.float32, -bound, bound)

    # One-time weight prep outside the hot path (f32 to bit-match reference;
    # use compute_dtype=jnp.bfloat16 when the precision budget allows).
    w_fused = prepare_fused_weight(w_act, w_sp)
    w_fused = jax.block_until_ready(w_fused)

    a_vec, s_vec = disentangle_net_fused(z, w_fused)
    jax.block_until_ready((a_vec, s_vec))

    # Correctness check against the plain-JAX reference of the torch forward.
    a_ref = z @ w_act.T
    s_ref = z @ w_sp.T
    assert a_vec.shape == (B, H) and s_vec.shape == (B, H)
    assert jnp.allclose(a_vec, a_ref, atol=1e-5, rtol=1e-5)
    assert jnp.allclose(s_vec, s_ref, atol=1e-5, rtol=1e-5)

    print("KERNEL_OK")
</pallas_src>

<mosaic_0001>
module attributes {stable_mosaic.version = 11 : i64} {
  func.func @_disentangle_fused_kernel(%arg0: memref<8x32xf32, #tpu.memory_space<vmem>>, %arg1: memref<32x128xf32, #tpu.memory_space<vmem>>, %arg2: memref<8x64xf32, #tpu.memory_space<vmem>>, %arg3: memref<8x64xf32, #tpu.memory_space<vmem>>) attributes {dimension_semantics = [], scalar_prefetch = 0 : i64, scratch_operands = 0 : i64, tpu.core_type = #tpu.core_type<tc>} {
    %c0 = arith.constant 0 : index
    %c0_0 = arith.constant 0 : index
    %0 = vector.load %arg0[%c0, %c0_0] : memref<8x32xf32, #tpu.memory_space<vmem>>, vector<8x32xf32>
    %c0_1 = arith.constant 0 : index
    %c0_2 = arith.constant 0 : index
    %1 = vector.load %arg1[%c0_1, %c0_2] : memref<32x128xf32, #tpu.memory_space<vmem>>, vector<32x128xf32>
    %cst = arith.constant dense<0.000000e+00> : vector<8x128xf32>
    %2 = tpu.matmul %0, %1, %cst {dimension_numbers = #tpu.dot_dimension_numbers<[1], [0], [0], [1], [0, 0, 1, 1], [], []>} : vector<8x32xf32>, vector<32x128xf32>, vector<8x128xf32> -> vector<8x128xf32>
    %3 = vector.extract_strided_slice %2 {offsets = [0, 0], sizes = [8, 64], strides = [1, 1]} : vector<8x128xf32> to vector<8x64xf32>
    %c0_3 = arith.constant 0 : index
    %c0_4 = arith.constant 0 : index
    %4 = vector.load %arg2[%c0_3, %c0_4] : memref<8x64xf32, #tpu.memory_space<vmem>>, vector<8x64xf32>
    tpu.vector_store %arg2[%c0_3, %c0_4], %3 {strides = array<i32>} : memref<8x64xf32, #tpu.memory_space<vmem>>, vector<8x64xf32>,
    %5 = vector.extract_strided_slice %2 {offsets = [0, 64], sizes = [8, 64], strides = [1, 1]} : vector<8x128xf32> to vector<8x64xf32>
    %c0_5 = arith.constant 0 : index
    %c0_6 = arith.constant 0 : index
    %6 = vector.load %arg3[%c0_5, %c0_6] : memref<8x64xf32, #tpu.memory_space<vmem>>, vector<8x64xf32>
    tpu.vector_store %arg3[%c0_5, %c0_6], %5 {strides = array<i32>} : memref<8x64xf32, #tpu.memory_space<vmem>>, vector<8x64xf32>,
    return
  }
}

</mosaic_0001>

<bundles_post_ra>
// kernel: tpu_custom_call.1
= control target key start
LH: loop header
LB: loop body
LE: loop exit
PB: predicated region body
PF: predicated region fallthrough
CT: control target
= control target key end

     0   :  { %9 = vsyncpa [#allocation3], 0  ;;  %s373_s0 = inlined_call_operand.hbm [shape: f32[8,32], index: 0, kind: input, shape index: {}]   ;;  %s374_s1 = inlined_call_operand.hbm [shape: f32[32,128], index: 1, kind: input, shape index: {}]   ;;  %s375_s2 = inlined_call_operand.hbm [shape: f32[8,64], index: 2, kind: output, shape index: {0}]   ;;  %s376_s3 = inlined_call_operand.hbm [shape: f32[8,64], index: 3, kind: output, shape index: {1}]  }
   0x1   :  { %10 = vsyncpa [#allocation6], 0 }
   0x2   :  { %11 = vsyncpa [#allocation4], 0 }
   0x3   :  { %12 = vsyncpa [#allocation9], 0  ;;  %s286_s12 = smov [#allocation2]   ;;  %s287_s14 = smov [#allocation5]  }
   0x4   :  { %s19_s13 = sshll.u32 %s286_s12, 4  ;;  %s28_s15 = sshll.u32 %s287_s14, 4  ;;  %s20_s13 = int_to_ptr.vmem [resolvable:$true] %s19_s13  ;;  %s316_s15 = int_to_ptr.vmem [resolvable:$true] %s28_s15 }
   0x5   :  { %s190_s18 = scalar_lea.hbm %s373_s0, 128 }
   0x6   :  { %p191_p0 = scmp.ne.s32.totalorder %s373_s0, %s190_s18  ;;  %p194_p1 = scmp.lt.u32.totalorder %s190_s18, %s373_s0 }
   0x8   :  { %p196_p2 = pnand %p194_p1, %p191_p0 }
   0xa   :  { %199 = shalt.err (!%p196_p2)
}
   0xb   :  { %s200_s23 = scalar_lea.vmem %s20_s13, 128  ;;  %p205_p4 = scmp.lt.s32.totalorder %s20_s13, %s20_s13 }
   0xc   :  { %p201_p3 = scmp.ne.s32.totalorder %s20_s13, %s200_s23  ;;  %p206_p5 = scmp.lt.s32.totalorder %s200_s23, %s200_s23 }
   0xe   :  { %p207_p6 = por %p206_p5, %p205_p4 }
  0x10   :  { %p208_p7 = pnand %p207_p6, %p201_p3 }
  0x12   :  { %211 = shalt.err (!%p208_p7)
}
  0x13   :  { %22 = dma.hbm_to_vmem [thread:$0]  %s373_s0, 128, %s20_s13, [#allocation3]  }
  0x14   :  { %s212_s28 = scalar_lea.hbm %s374_s1, 512 }
  0x15   :  { %p213_p8 = scmp.ne.s32.totalorder %s374_s1, %s212_s28  ;;  %p216_p9 = scmp.lt.u32.totalorder %s212_s28, %s374_s1 }
  0x17   :  { %p218_p10 = pnand %p216_p9, %p213_p8 }
  0x19   :  { %221 = shalt.err (!%p218_p10)
}
  0x1a   :  { %s222_s6 = scalar_lea.vmem %s316_s15, 512  ;;  %p227_p12 = scmp.lt.s32.totalorder %s316_s15, %s316_s15 }
  0x1b   :  { %p223_p11 = scmp.ne.s32.totalorder %s316_s15, %s222_s6  ;;  %p228_p13 = scmp.lt.s32.totalorder %s222_s6, %s222_s6 }
  0x1d   :  { %p229_p0 = por %p228_p13, %p227_p12 }
  0x1f   :  { %p230_p1 = pnand %p229_p0, %p223_p11 }
  0x21   :  { %233 = shalt.err (!%p230_p1)
}
  0x22   :  { %s288_s0 = smov 128   ;;  %s289_s7 = smov 8  }
  0x23   :  { %34 = dma.hbm_to_vmem [thread:$0]  %s374_s1, 512, %s316_s15, [#allocation6], %s288_s0, %s288_s0, %s289_s7  }
  0x24   :  { %278 = dma.done.wait [#allocation3], 128  }
  0x25   :  { %279 = vsyncadd [#allocation3], 4294967168 }
  0x26   :  { %280 = dma.done.wait [#allocation6], 512  }
  0x27   :  { %281 = vsyncadd [#allocation6], 4294966784  ;;  %v290_v0 = vmov 0.0|0.0   ;;  %vm291_vm0 = vmmov 0   ;;  %v292_v1 = vmov 0.0   ;;  %v42_v2 = vld [vmem:[#allocation5] sm:$0xff] }
  0x28   :  { %174 = vmatprep.subr.bf16.mxu0 %v290_v0  ;;  %171 = vmatprep.mubr.msk.f32.mxu0 %vm291_vm0, %v292_v1  ;;  %v43_v3 = vld [vmem:[#allocation5 + $0x8] sm:$0xff]  ;;  %v44_v4 = vld [vmem:[#allocation5 + $0x10] sm:$0xff]  ;;  %v45_v6 = vld [vmem:[#allocation5 + $0x18] sm:$0xff]  ;;  %vm46_vm1 = vcmask 261120   ;;  %s293_s1 = smov [#allocation7]   ;;  %vm120_vm2 = vcmask 523264  }
  0x29   :  { %v175_v5 = vpack.c.bf16 %v43_v3, %v42_v2  ;;  %v178_v7 = vpack.c.bf16 %v45_v6, %v44_v4  ;;  %v41_v8 = vld [vmem:[#allocation2] sm:$0xff]  ;;  %s133_s10 = sshll.u32 %s293_s1, 4  ;;  %s294_s11 = smov 64   ;;  %s134_s10 = int_to_ptr.vmem [resolvable:$true] %s133_s10 }
  0x2a   :  { %s234_s12 = scalar_lea.vmem %s134_s10, 128  ;;  %p239_p3 = scmp.lt.s32.totalorder %s134_s10, %s134_s10 }
  0x2b   :  { %176 = vmatpush3.bf16.msra.mxu0 %v175_v5  ;;  %p235_p2 = scmp.ne.s32.totalorder %s134_s10, %s234_s12  ;;  %p240_p4 = scmp.lt.s32.totalorder %s234_s12, %s234_s12 }
  0x2c   :  { %177 = vmatprep.subr.bf16.mxu0 %v290_v0 }
  0x2d   :  { %p241_p5 = por %p240_p4, %p239_p3 }
  0x2f   :  { %179 = vmatpush3.bf16.msra.mxu0 %v178_v7  ;;  %p242_p6 = pnand %p241_p5, %p235_p2 }
  0x32   :  { %172 = vmatmul.mubr.msk.f32.vlgmr.msra.gmra.mrb[0].mxu0 %vm46_vm1, %v41_v8 }
 0x105   :  { %v116_v9 = vpop.f32.mrb[0].mxu0 }
 0x106   :  { %v173_v10 = vpop.f32.mrb[1].mxu0  ;;  %123 = vrot.lane.b32.xlu0 %v116_v9, %s294_s11  ;;  %121 = vst.msk [vmem:[#allocation7] sm:$0xff] %vm120_vm2, %v116_v9 }
 0x107   :  { %245 = shalt.err (!%p242_p6)
}
 0x108   :  { %s246_s15 = scalar_lea.hbm %s375_s2, 128 }
 0x109   :  { %p247_p7 = scmp.ne.s32.totalorder %s375_s2, %s246_s15  ;;  %p250_p8 = scmp.lt.u32.totalorder %s246_s15, %s375_s2 }
 0x10b   :  { %p252_p9 = pnand %p250_p8, %p247_p7 }
 0x10d   :  { %255 = shalt.err (!%p252_p9)
}
 0x10e   :  { %136 = dma.vmem_to_hbm [thread:$0]  %s134_s10, 128, %s375_s2, [#allocation4]  }
 0x10f   :  { %s295_s22 = smov [#allocation8]  }
 0x110   :  { %s143_s23 = sshll.u32 %s295_s22, 4  ;;  %s144_s23 = int_to_ptr.vmem [resolvable:$true] %s143_s23 }
 0x111   :  { %s256_s24 = scalar_lea.vmem %s144_s23, 128  ;;  %p261_p11 = scmp.lt.s32.totalorder %s144_s23, %s144_s23 }
 0x112   :  { %p257_p10 = scmp.ne.s32.totalorder %s144_s23, %s256_s24  ;;  %p262_p12 = scmp.lt.s32.totalorder %s256_s24, %s256_s24 }
 0x114   :  { %p263_p13 = por %p262_p12, %p261_p11 }
 0x116   :  { %p264_p0 = pnand %p263_p13, %p257_p10 }
 0x178   :  { %v124_v11 = vpop.permute.xlu0 %123 }
 0x179   :  { %126 = vst.msk [vmem:[#allocation8] sm:$0xff] %vm120_vm2, %v124_v11 }
 0x17a   :  { %267 = shalt.err (!%p264_p0)
}
 0x17b   :  { %s268_s27 = scalar_lea.hbm %s376_s3, 128 }
 0x17c   :  { %p269_p1 = scmp.ne.s32.totalorder %s376_s3, %s268_s27  ;;  %p272_p2 = scmp.lt.u32.totalorder %s268_s27, %s376_s3 }
 0x17e   :  { %p274_p3 = pnand %p272_p2, %p269_p1 }
 0x180   :  { %277 = shalt.err (!%p274_p3)
}
 0x181   :  { %146 = dma.vmem_to_hbm [thread:$0]  %s144_s23, 128, %s376_s3, [#allocation9]  }
 0x182   :  { %282 = dma.done.wait [#allocation4], 128  }
 0x183   :  { %283 = vsyncadd [#allocation4], 4294967168 }
 0x184   :  { %284 = dma.done.wait [#allocation9], 128  }
 0x185   :  { %285 = vsyncadd [#allocation9], 4294967168 }
 0x186   :  { %153 = vsyncpa [#allocation3], 1 }
 0x187   :  { %154 = vsyncpa [#allocation6], 1 }
 0x188   :  { %155 = vsyncpa [#allocation4], 1 }
 0x189   :  { %156 = vsyncpa [#allocation9], 1 }

</bundles_post_ra>
